<compile_context>
chip_gen: v5e
topology: v5e:2x2
jax: 0.10.0
libtpu: 0.0.40
codegen_flags: <defaults>
</compile_context>

<pallas_src>
from functools import partial

import jax
import jax.numpy as jnp
from jax.experimental import pallas as pl
from jax.experimental.pallas import tpu as pltpu


# ---------------- model hyper-parameters (PyTorch CNN defaults) -------------
IN_LEN = 64        # time-sequence length
INPUT_DIM = 9      # sensor channels
OUTPUT_DIM = 3     # class labels
C_MID = 64         # conv channels
K1, S1 = 10, 5     # conv1 kernel / stride
K2 = 2             # conv2 kernel (stride 1)
FC1_OUT = 500
FC2_OUT = 50
FC1_PAD = 512      # fc1 width padded to a multiple of 128 lanes
FC2_PAD = 64       # fc2 width padded to a sublane-friendly size
OUT_PAD = 128      # lane-dense padded classifier output width

T1 = (IN_LEN - K1) // S1 + 1   # conv1 out length  = 11
P1 = T1 // 2                   # after MaxPool(2)  = 5
T2 = P1 - K2 + 1               # conv2 out length  = 4
P2 = T2 // 2                   # after MaxPool(2)  = 2   -> fc_len = 64*2 = 128
BN_EPS = 1e-5


# --------------------------- fused Pallas kernel ----------------------------
def _cnn_kernel(patches_ref, w1_ref, cslab_ref, w2_ref, wf1_ref, fslab_ref,
                wf2_ref, wc_ref, out_ref, *, batch):
    B = batch
    cs = cslab_ref[...]          # (6, 64)  : b1, g1, be1, b2, g2, be2
    fs = fslab_ref[...]          # (5, 512) : bf1, g3, be3, bf2(pad), bc(pad)

    def bn(z, gamma, beta):
        # training-mode BatchNorm1d: biased batch statistics over axis 0
        m = jnp.mean(z, axis=0, keepdims=True)
        v = jnp.mean((z - m) ** 2, axis=0, keepdims=True)
        return (z - m) * jax.lax.rsqrt(v + BN_EPS) * gamma + beta

    # ---- conv1 as one MXU matmul over im2col patches, then BN + ReLU ----
    h1 = jnp.dot(patches_ref[...], w1_ref[...],
                 preferred_element_type=jnp.float32) + cs[0:1, :]
    h1 = jnp.maximum(bn(h1, cs[1:2, :], cs[2:3, :]), 0.0)            # (B*T1, 64)

    # ---- MaxPool1d(2) over length (pairwise max, drop odd tail) ----
    # TODO(synk): if the MLIR dump shows these reshapes materialize VMEM copies,
    # switch to strided sublane slices (h[:, 0:2*P1:2, :] / h[:, 1:2*P1:2, :]).
    h1 = h1.reshape(B, T1, C_MID)[:, :2 * P1, :].reshape(B, P1, 2, C_MID)
    pool1 = jnp.maximum(h1[:, :, 0, :], h1[:, :, 1, :])              # (B, P1, 64)

    # ---- conv2 (kernel 2, stride 1) as ONE fused K=128 matmul, BN + ReLU ----
    c_cat = jnp.concatenate([pool1[:, 0:T2, :], pool1[:, 1:T2 + 1, :]],
                            axis=-1).reshape(B * T2, 2 * C_MID)      # (B*T2, 128)
    h2 = jnp.dot(c_cat, w2_ref[...],
                 preferred_element_type=jnp.float32) + cs[3:4, :]
    h2 = jnp.maximum(bn(h2, cs[4:5, :], cs[5:6, :]), 0.0)            # (B*T2, 64)

    # ---- MaxPool1d(2) over length ----
    h2 = h2.reshape(B, P2, 2, C_MID)
    pool2 = jnp.maximum(h2[:, :, 0, :], h2[:, :, 1, :])              # (B, 2, 64)
    f_cat = jnp.concatenate([pool2[:, 0, :], pool2[:, 1, :]], axis=-1)  # (B, 128)

    # ---- fc1 as ONE fused K=128 matmul (flatten folded into weight), BN, ReLU
    y = jnp.dot(f_cat, wf1_ref[...],
                preferred_element_type=jnp.float32) + fs[0:1, :]
    y = jnp.maximum(bn(y, fs[1:2, :], fs[2:3, :]), 0.0)              # (B, 512)

    # ---- fc2 + ReLU (padded 512 -> 64) ----
    y = jnp.maximum(jnp.dot(y, wf2_ref[...],
                            preferred_element_type=jnp.float32)
                    + fs[3:4, :FC2_PAD], 0.0)                        # (B, 64)

    # ---- classifier (padded to 128 lanes for a lane-dense store) ----
    out_ref[...] = (jnp.dot(y, wc_ref[...], preferred_element_type=jnp.float32)
                    + fs[4:5, :OUT_PAD])


# ------------------------------- wrapper ------------------------------------
def cnn_forward(x, p):
    """x: (B, INPUT_DIM, IN_LEN) float32, p: PyTorch-shaped parameter dict."""
    B = x.shape[0]
    x = x.astype(jnp.float32)

    # im2col for conv1 (pure layout plumbing; the matmul runs in-kernel).
    # TODO(synk): for large B, build patches in-kernel from a VMEM-resident x
    # to avoid this extra XLA op and its (B*T1, 90) HBM round trip.
    idx = S1 * jnp.arange(T1)[:, None] + jnp.arange(K1)[None, :]      # (T1, K1)
    patches = x[:, :, idx]                                            # (B,Cin,T1,K1)
    patches = jnp.transpose(patches, (0, 2, 1, 3)).reshape(B * T1, INPUT_DIM * K1)

    # ---- pre-transpose / repack weights once, outside the kernel ----
    w1 = p["conv1_w"].reshape(C_MID, INPUT_DIM * K1).T                # (90, 64)

    # conv2: stack the two taps into a single (128, 64) weight (K=128 matmul)
    w2 = jnp.concatenate([p["conv2_w"][:, :, 0].T,
                          p["conv2_w"][:, :, 1].T], axis=0)           # (128, 64)

    # conv-side bias/BN slab: one DMA instead of six
    cslab = jnp.stack([p["conv1_b"], p["bn1_g"], p["bn1_b"],
                       p["conv2_b"], p["bn2_g"], p["bn2_b"]], axis=0) # (6, 64)

    # fc1: PyTorch flattens conv output channel-major (index = c*P2 + l);
    # fold that into a single stacked (128, 512) weight (padded 500 -> 512).
    wf1_ocl = p["fc1_w"].reshape(FC1_OUT, C_MID, P2)                  # [o, c, l]
    wf1 = jnp.concatenate([wf1_ocl[:, :, 0].T, wf1_ocl[:, :, 1].T], axis=0)
    wf1 = jnp.zeros((2 * C_MID, FC1_PAD), jnp.float32).at[:, :FC1_OUT].set(wf1)

    # fc-side bias/BN slab (gamma/beta padded with ZEROS so padded lanes stay 0)
    def pad_to(v, n):
        return jnp.zeros((n,), jnp.float32).at[:v.shape[0]].set(v)

    fslab = jnp.stack([pad_to(p["fc1_b"], FC1_PAD),
                       pad_to(p["bn3_g"], FC1_PAD),
                       pad_to(p["bn3_b"], FC1_PAD),
                       pad_to(p["fc2_b"], FC1_PAD),
                       pad_to(p["cls_b"], FC1_PAD)], axis=0)          # (5, 512)

    # fc2 padded (500,50) -> (512,64); classifier padded (50,3) -> (64,128)
    wf2 = jnp.zeros((FC1_PAD, FC2_PAD), jnp.float32).at[
        :FC1_OUT, :FC2_OUT].set(p["fc2_w"].T)
    wc = jnp.zeros((FC2_PAD, OUT_PAD), jnp.float32).at[
        :FC2_OUT, :OUTPUT_DIM].set(p["cls_w"].T)

    out = pl.pallas_call(
        partial(_cnn_kernel, batch=B),
        out_shape=jax.ShapeDtypeStruct((B, OUT_PAD), jnp.float32),
        # Gridless: all weights (~0.5 MB) + per-sample activations stay resident.
        # 32 MiB scoped VMEM is safe on v5e/v6e/v7x and covers B up to a few
        # thousand; beyond that switch to a batch-tiled grid (see TODO above).
        compiler_params=pltpu.CompilerParams(vmem_limit_bytes=32 * 1024 * 1024),
    )(patches, w1, cslab, w2, wf1, fslab, wf2, wc)
    return out[:, :OUTPUT_DIM]


# ----------------------- deterministic parameter init -----------------------
def init_params(key):
    ks = jax.random.split(key, 10)
    fc_len = C_MID * P2

    def u(kk, shape, fan_in):
        bound = 1.0 / jnp.sqrt(jnp.float32(fan_in))
        return jax.random.uniform(kk, shape, jnp.float32, -bound, bound)

    return {
        "conv1_w": u(ks[0], (C_MID, INPUT_DIM, K1), INPUT_DIM * K1),
        "conv1_b": u(ks[1], (C_MID,), INPUT_DIM * K1),
        "bn1_g": jnp.ones((C_MID,), jnp.float32),
        "bn1_b": jnp.zeros((C_MID,), jnp.float32),
        "conv2_w": u(ks[2], (C_MID, C_MID, K2), C_MID * K2),
        "conv2_b": u(ks[3], (C_MID,), C_MID * K2),
        "bn2_g": jnp.ones((C_MID,), jnp.float32),
        "bn2_b": jnp.zeros((C_MID,), jnp.float32),
        "fc1_w": u(ks[4], (FC1_OUT, fc_len), fc_len),
        "fc1_b": u(ks[5], (FC1_OUT,), fc_len),
        "bn3_g": jnp.ones((FC1_OUT,), jnp.float32),
        "bn3_b": jnp.zeros((FC1_OUT,), jnp.float32),
        "fc2_w": u(ks[6], (FC2_OUT, FC1_OUT), FC1_OUT),
        "fc2_b": u(ks[7], (FC2_OUT,), FC1_OUT),
        "cls_w": u(ks[8], (OUTPUT_DIM, FC2_OUT), FC2_OUT),
        "cls_b": u(ks[9], (OUTPUT_DIM,), FC2_OUT),
    }


# ----------------- pure-JAX reference (silent numerical check) --------------
def cnn_ref(x, p):
    x = x.astype(jnp.float32)

    def conv1d(z, w, b, stride):
        out = jax.lax.conv_general_dilated(
            z, w, window_strides=(stride,), padding="VALID",
            dimension_numbers=("NCH", "OIH", "NCH"))
        return out + b[None, :, None]

    def bn_ncl(z, g, beta):
        m = jnp.mean(z, axis=(0, 2), keepdims=True)
        v = jnp.mean((z - m) ** 2, axis=(0, 2), keepdims=True)
        return (z - m) / jnp.sqrt(v + BN_EPS) * g[None, :, None] + beta[None, :, None]

    def bn_nc(z, g, beta):
        m = jnp.mean(z, axis=0, keepdims=True)
        v = jnp.mean((z - m) ** 2, axis=0, keepdims=True)
        return (z - m) / jnp.sqrt(v + BN_EPS) * g + beta

    def maxpool(z):
        L = z.shape[-1] // 2
        return jnp.max(z[:, :, :2 * L].reshape(z.shape[0], z.shape[1], L, 2), -1)

    y = jnp.maximum(bn_ncl(conv1d(x, p["conv1_w"], p["conv1_b"], S1),
                           p["bn1_g"], p["bn1_b"]), 0.0)
    y = maxpool(y)
    y = jnp.maximum(bn_ncl(conv1d(y, p["conv2_w"], p["conv2_b"], 1),
                           p["bn2_g"], p["bn2_b"]), 0.0)
    y = maxpool(y)
    y = y.reshape(y.shape[0], -1)                       # PyTorch .view(B, -1)
    y = jnp.maximum(bn_nc(y @ p["fc1_w"].T + p["fc1_b"], p["bn3_g"], p["bn3_b"]), 0.0)
    y = jnp.maximum(y @ p["fc2_w"].T + p["fc2_b"], 0.0)
    return y @ p["cls_w"].T + p["cls_b"]


if __name__ == "__main__":
    batch = 2
    key = jax.random.PRNGKey(0)
    k_x, k_p = jax.random.split(key)
    x = jax.random.normal(k_x, (batch, INPUT_DIM, IN_LEN), jnp.float32)
    params = init_params(k_p)

    out = cnn_forward(x, params)
    out = jax.block_until_ready(out)

    ref = cnn_ref(x, params)
    assert out.shape == (batch, OUTPUT_DIM)
    assert jnp.allclose(out, ref, atol=3e-3, rtol=3e-3)

    print("KERNEL_OK")
</pallas_src>

<mosaic_0001>
module attributes {stable_mosaic.version = 11 : i64} {
  func.func @_cnn_kernel(%arg0: memref<22x90xf32, #tpu.memory_space<vmem>>, %arg1: memref<90x64xf32, #tpu.memory_space<vmem>>, %arg2: memref<6x64xf32, #tpu.memory_space<vmem>>, %arg3: memref<128x64xf32, #tpu.memory_space<vmem>>, %arg4: memref<128x512xf32, #tpu.memory_space<vmem>>, %arg5: memref<5x512xf32, #tpu.memory_space<vmem>>, %arg6: memref<512x64xf32, #tpu.memory_space<vmem>>, %arg7: memref<64x128xf32, #tpu.memory_space<vmem>>, %arg8: memref<2x128xf32, #tpu.memory_space<vmem>>) attributes {dimension_semantics = [], scalar_prefetch = 0 : i64, scratch_operands = 0 : i64, tpu.core_type = #tpu.core_type<tc>} {
    %c0 = arith.constant 0 : index
    %c0_0 = arith.constant 0 : index
    %0 = vector.load %arg2[%c0, %c0_0] : memref<6x64xf32, #tpu.memory_space<vmem>>, vector<6x64xf32>
    %c0_1 = arith.constant 0 : index
    %c0_2 = arith.constant 0 : index
    %1 = vector.load %arg5[%c0_1, %c0_2] : memref<5x512xf32, #tpu.memory_space<vmem>>, vector<5x512xf32>
    %c0_3 = arith.constant 0 : index
    %c0_4 = arith.constant 0 : index
    %2 = vector.load %arg0[%c0_3, %c0_4] : memref<22x90xf32, #tpu.memory_space<vmem>>, vector<22x90xf32>
    %c0_5 = arith.constant 0 : index
    %c0_6 = arith.constant 0 : index
    %3 = vector.load %arg1[%c0_5, %c0_6] : memref<90x64xf32, #tpu.memory_space<vmem>>, vector<90x64xf32>
    %cst = arith.constant dense<0.000000e+00> : vector<22x64xf32>
    %4 = tpu.matmul %2, %3, %cst {dimension_numbers = #tpu.dot_dimension_numbers<[1], [0], [0], [1], [0, 0, 1, 1], [], []>} : vector<22x90xf32>, vector<90x64xf32>, vector<22x64xf32> -> vector<22x64xf32>
    %5 = vector.extract_strided_slice %0 {offsets = [0, 0], sizes = [1, 64], strides = [1, 1]} : vector<6x64xf32> to vector<1x64xf32>
    %6 = vector.broadcast %5 : vector<1x64xf32> to vector<22x64xf32>
    %7 = arith.addf %4, %6 : vector<22x64xf32>
    %8 = vector.extract_strided_slice %0 {offsets = [1, 0], sizes = [1, 64], strides = [1, 1]} : vector<6x64xf32> to vector<1x64xf32>
    %9 = vector.extract_strided_slice %0 {offsets = [2, 0], sizes = [1, 64], strides = [1, 1]} : vector<6x64xf32> to vector<1x64xf32>
    %cst_7 = arith.constant dense<0.000000e+00> : vector<64xf32>
    %10 = vector.multi_reduction <add>, %7, %cst_7 [0] : vector<22x64xf32> to vector<64xf32>
    %11 = vector.shape_cast %10 : vector<64xf32> to vector<1x64xf32>
    %cst_8 = arith.constant 2.200000e+01 : f32
    %12 = vector.broadcast %cst_8 : f32 to vector<1x64xf32>
    %13 = arith.divf %11, %12 : vector<1x64xf32>
    %14 = vector.broadcast %13 : vector<1x64xf32> to vector<22x64xf32>
    %15 = arith.subf %7, %14 : vector<22x64xf32>
    %16 = arith.mulf %15, %15 : vector<22x64xf32>
    %cst_9 = arith.constant dense<0.000000e+00> : vector<64xf32>
    %17 = vector.multi_reduction <add>, %16, %cst_9 [0] : vector<22x64xf32> to vector<64xf32>
    %18 = vector.shape_cast %17 : vector<64xf32> to vector<1x64xf32>
    %cst_10 = arith.constant 2.200000e+01 : f32
    %19 = vector.broadcast %cst_10 : f32 to vector<1x64xf32>
    %20 = arith.divf %18, %19 : vector<1x64xf32>
    %21 = vector.broadcast %13 : vector<1x64xf32> to vector<22x64xf32>
    %22 = arith.subf %7, %21 : vector<22x64xf32>
    %cst_11 = arith.constant 9.99999974E-6 : f32
    %23 = vector.broadcast %cst_11 : f32 to vector<1x64xf32>
    %24 = arith.addf %20, %23 : vector<1x64xf32>
    %25 = math.rsqrt %24 : vector<1x64xf32>
    %26 = vector.broadcast %25 : vector<1x64xf32> to vector<22x64xf32>
    %27 = arith.mulf %22, %26 : vector<22x64xf32>
    %28 = vector.broadcast %8 : vector<1x64xf32> to vector<22x64xf32>
    %29 = arith.mulf %27, %28 : vector<22x64xf32>
    %30 = vector.broadcast %9 : vector<1x64xf32> to vector<22x64xf32>
    %31 = arith.addf %29, %30 : vector<22x64xf32>
    %cst_12 = arith.constant 0.000000e+00 : f32
    %32 = vector.broadcast %cst_12 : f32 to vector<22x64xf32>
    %33 = arith.maximumf %31, %32 : vector<22x64xf32>
    %34 = vector.shape_cast %33 : vector<22x64xf32> to vector<2x11x64xf32>
    %35 = vector.extract_strided_slice %34 {offsets = [0, 0, 0], sizes = [2, 10, 64], strides = [1, 1, 1]} : vector<2x11x64xf32> to vector<2x10x64xf32>
    %36 = vector.shape_cast %35 : vector<2x10x64xf32> to vector<2x5x2x64xf32>
    %37 = vector.extract_strided_slice %36 {offsets = [0, 0, 0, 0], sizes = [2, 5, 1, 64], strides = [1, 1, 1, 1]} : vector<2x5x2x64xf32> to vector<2x5x1x64xf32>
    %38 = vector.shape_cast %37 : vector<2x5x1x64xf32> to vector<2x5x64xf32>
    %39 = vector.extract_strided_slice %36 {offsets = [0, 0, 1, 0], sizes = [2, 5, 1, 64], strides = [1, 1, 1, 1]} : vector<2x5x2x64xf32> to vector<2x5x1x64xf32>
    %40 = vector.shape_cast %39 : vector<2x5x1x64xf32> to vector<2x5x64xf32>
    %41 = arith.maximumf %38, %40 : vector<2x5x64xf32>
    %42 = vector.extract_strided_slice %41 {offsets = [0, 0, 0], sizes = [2, 4, 64], strides = [1, 1, 1]} : vector<2x5x64xf32> to vector<2x4x64xf32>
    %43 = vector.extract_strided_slice %41 {offsets = [0, 1, 0], sizes = [2, 4, 64], strides = [1, 1, 1]} : vector<2x5x64xf32> to vector<2x4x64xf32>
    %44 = tpu.concatenate %42, %43 in 2 : vector<2x4x64xf32>, vector<2x4x64xf32> -> vector<2x4x128xf32>
    %45 = vector.shape_cast %44 : vector<2x4x128xf32> to vector<8x128xf32>
    %c0_13 = arith.constant 0 : index
    %c0_14 = arith.constant 0 : index
    %46 = vector.load %arg3[%c0_13, %c0_14] : memref<128x64xf32, #tpu.memory_space<vmem>>, vector<128x64xf32>
    %cst_15 = arith.constant dense<0.000000e+00> : vector<8x64xf32>
    %47 = tpu.matmul %45, %46, %cst_15 {dimension_numbers = #tpu.dot_dimension_numbers<[1], [0], [0], [1], [0, 0, 1, 1], [], []>} : vector<8x128xf32>, vector<128x64xf32>, vector<8x64xf32> -> vector<8x64xf32>
    %48 = vector.extract_strided_slice %0 {offsets = [3, 0], sizes = [1, 64], strides = [1, 1]} : vector<6x64xf32> to vector<1x64xf32>
    %49 = vector.broadcast %48 : vector<1x64xf32> to vector<8x64xf32>
    %50 = arith.addf %47, %49 : vector<8x64xf32>
    %51 = vector.extract_strided_slice %0 {offsets = [4, 0], sizes = [1, 64], strides = [1, 1]} : vector<6x64xf32> to vector<1x64xf32>
    %52 = vector.extract_strided_slice %0 {offsets = [5, 0], sizes = [1, 64], strides = [1, 1]} : vector<6x64xf32> to vector<1x64xf32>
    %cst_16 = arith.constant dense<0.000000e+00> : vector<64xf32>
    %53 = vector.multi_reduction <add>, %50, %cst_16 [0] : vector<8x64xf32> to vector<64xf32>
    %54 = vector.shape_cast %53 : vector<64xf32> to vector<1x64xf32>
    %cst_17 = arith.constant 8.000000e+00 : f32
    %55 = vector.broadcast %cst_17 : f32 to vector<1x64xf32>
    %56 = arith.divf %54, %55 : vector<1x64xf32>
    %57 = vector.broadcast %56 : vector<1x64xf32> to vector<8x64xf32>
    %58 = arith.subf %50, %57 : vector<8x64xf32>
    %59 = arith.mulf %58, %58 : vector<8x64xf32>
    %cst_18 = arith.constant dense<0.000000e+00> : vector<64xf32>
    %60 = vector.multi_reduction <add>, %59, %cst_18 [0] : vector<8x64xf32> to vector<64xf32>
    %61 = vector.shape_cast %60 : vector<64xf32> to vector<1x64xf32>
    %cst_19 = arith.constant 8.000000e+00 : f32
    %62 = vector.broadcast %cst_19 : f32 to vector<1x64xf32>
    %63 = arith.divf %61, %62 : vector<1x64xf32>
    %64 = vector.broadcast %56 : vector<1x64xf32> to vector<8x64xf32>
    %65 = arith.subf %50, %64 : vector<8x64xf32>
    %cst_20 = arith.constant 9.99999974E-6 : f32
    %66 = vector.broadcast %cst_20 : f32 to vector<1x64xf32>
    %67 = arith.addf %63, %66 : vector<1x64xf32>
    %68 = math.rsqrt %67 : vector<1x64xf32>
    %69 = vector.broadcast %68 : vector<1x64xf32> to vector<8x64xf32>
    %70 = arith.mulf %65, %69 : vector<8x64xf32>
    %71 = vector.broadcast %51 : vector<1x64xf32> to vector<8x64xf32>
    %72 = arith.mulf %70, %71 : vector<8x64xf32>
    %73 = vector.broadcast %52 : vector<1x64xf32> to vector<8x64xf32>
    %74 = arith.addf %72, %73 : vector<8x64xf32>
    %cst_21 = arith.constant 0.000000e+00 : f32
    %75 = vector.broadcast %cst_21 : f32 to vector<8x64xf32>
    %76 = arith.maximumf %74, %75 : vector<8x64xf32>
    %77 = vector.shape_cast %76 : vector<8x64xf32> to vector<2x2x2x64xf32>
    %78 = vector.extract_strided_slice %77 {offsets = [0, 0, 0, 0], sizes = [2, 2, 1, 64], strides = [1, 1, 1, 1]} : vector<2x2x2x64xf32> to vector<2x2x1x64xf32>
    %79 = vector.shape_cast %78 : vector<2x2x1x64xf32> to vector<2x2x64xf32>
    %80 = vector.extract_strided_slice %77 {offsets = [0, 0, 1, 0], sizes = [2, 2, 1, 64], strides = [1, 1, 1, 1]} : vector<2x2x2x64xf32> to vector<2x2x1x64xf32>
    %81 = vector.shape_cast %80 : vector<2x2x1x64xf32> to vector<2x2x64xf32>
    %82 = arith.maximumf %79, %81 : vector<2x2x64xf32>
    %83 = vector.extract_strided_slice %82 {offsets = [0, 0, 0], sizes = [2, 1, 64], strides = [1, 1, 1]} : vector<2x2x64xf32> to vector<2x1x64xf32>
    %84 = vector.shape_cast %83 : vector<2x1x64xf32> to vector<2x64xf32>
    %85 = vector.extract_strided_slice %82 {offsets = [0, 1, 0], sizes = [2, 1, 64], strides = [1, 1, 1]} : vector<2x2x64xf32> to vector<2x1x64xf32>
    %86 = vector.shape_cast %85 : vector<2x1x64xf32> to vector<2x64xf32>
    %87 = tpu.concatenate %84, %86 in 1 : vector<2x64xf32>, vector<2x64xf32> -> vector<2x128xf32>
    %c0_22 = arith.constant 0 : index
    %c0_23 = arith.constant 0 : index
    %88 = vector.load %arg4[%c0_22, %c0_23] : memref<128x512xf32, #tpu.memory_space<vmem>>, vector<128x512xf32>
    %cst_24 = arith.constant dense<0.000000e+00> : vector<2x512xf32>
    %89 = tpu.matmul %87, %88, %cst_24 {dimension_numbers = #tpu.dot_dimension_numbers<[1], [0], [0], [1], [0, 0, 1, 1], [], []>} : vector<2x128xf32>, vector<128x512xf32>, vector<2x512xf32> -> vector<2x512xf32>
    %90 = vector.extract_strided_slice %1 {offsets = [0, 0], sizes = [1, 512], strides = [1, 1]} : vector<5x512xf32> to vector<1x512xf32>
    %91 = vector.broadcast %90 : vector<1x512xf32> to vector<2x512xf32>
    %92 = arith.addf %89, %91 : vector<2x512xf32>
    %93 = vector.extract_strided_slice %1 {offsets = [1, 0], sizes = [1, 512], strides = [1, 1]} : vector<5x512xf32> to vector<1x512xf32>
    %94 = vector.extract_strided_slice %1 {offsets = [2, 0], sizes = [1, 512], strides = [1, 1]} : vector<5x512xf32> to vector<1x512xf32>
    %cst_25 = arith.constant dense<0.000000e+00> : vector<512xf32>
    %95 = vector.multi_reduction <add>, %92, %cst_25 [0] : vector<2x512xf32> to vector<512xf32>
    %96 = vector.shape_cast %95 : vector<512xf32> to vector<1x512xf32>
    %cst_26 = arith.constant 2.000000e+00 : f32
    %97 = vector.broadcast %cst_26 : f32 to vector<1x512xf32>
    %98 = arith.divf %96, %97 : vector<1x512xf32>
    %99 = vector.broadcast %98 : vector<1x512xf32> to vector<2x512xf32>
    %100 = arith.subf %92, %99 : vector<2x512xf32>
    %101 = arith.mulf %100, %100 : vector<2x512xf32>
    %cst_27 = arith.constant dense<0.000000e+00> : vector<512xf32>
    %102 = vector.multi_reduction <add>, %101, %cst_27 [0] : vector<2x512xf32> to vector<512xf32>
    %103 = vector.shape_cast %102 : vector<512xf32> to vector<1x512xf32>
    %cst_28 = arith.constant 2.000000e+00 : f32
    %104 = vector.broadcast %cst_28 : f32 to vector<1x512xf32>
    %105 = arith.divf %103, %104 : vector<1x512xf32>
    %106 = vector.broadcast %98 : vector<1x512xf32> to vector<2x512xf32>
    %107 = arith.subf %92, %106 : vector<2x512xf32>
    %cst_29 = arith.constant 9.99999974E-6 : f32
    %108 = vector.broadcast %cst_29 : f32 to vector<1x512xf32>
    %109 = arith.addf %105, %108 : vector<1x512xf32>
    %110 = math.rsqrt %109 : vector<1x512xf32>
    %111 = vector.broadcast %110 : vector<1x512xf32> to vector<2x512xf32>
    %112 = arith.mulf %107, %111 : vector<2x512xf32>
    %113 = vector.broadcast %93 : vector<1x512xf32> to vector<2x512xf32>
    %114 = arith.mulf %112, %113 : vector<2x512xf32>
    %115 = vector.broadcast %94 : vector<1x512xf32> to vector<2x512xf32>
    %116 = arith.addf %114, %115 : vector<2x512xf32>
    %cst_30 = arith.constant 0.000000e+00 : f32
    %117 = vector.broadcast %cst_30 : f32 to vector<2x512xf32>
    %118 = arith.maximumf %116, %117 : vector<2x512xf32>
    %c0_31 = arith.constant 0 : index
    %c0_32 = arith.constant 0 : index
    %119 = vector.load %arg6[%c0_31, %c0_32] : memref<512x64xf32, #tpu.memory_space<vmem>>, vector<512x64xf32>
    %cst_33 = arith.constant dense<0.000000e+00> : vector<2x64xf32>
    %120 = tpu.matmul %118, %119, %cst_33 {dimension_numbers = #tpu.dot_dimension_numbers<[1], [0], [0], [1], [0, 0, 1, 1], [], []>} : vector<2x512xf32>, vector<512x64xf32>, vector<2x64xf32> -> vector<2x64xf32>
    %121 = vector.extract_strided_slice %1 {offsets = [3, 0], sizes = [1, 64], strides = [1, 1]} : vector<5x512xf32> to vector<1x64xf32>
    %122 = vector.broadcast %121 : vector<1x64xf32> to vector<2x64xf32>
    %123 = arith.addf %120, %122 : vector<2x64xf32>
    %cst_34 = arith.constant 0.000000e+00 : f32
    %124 = vector.broadcast %cst_34 : f32 to vector<2x64xf32>
    %125 = arith.maximumf %123, %124 : vector<2x64xf32>
    %c0_35 = arith.constant 0 : index
    %c0_36 = arith.constant 0 : index
    %126 = vector.load %arg7[%c0_35, %c0_36] : memref<64x128xf32, #tpu.memory_space<vmem>>, vector<64x128xf32>
    %cst_37 = arith.constant dense<0.000000e+00> : vector<2x128xf32>
    %127 = tpu.matmul %125, %126, %cst_37 {dimension_numbers = #tpu.dot_dimension_numbers<[1], [0], [0], [1], [0, 0, 1, 1], [], []>} : vector<2x64xf32>, vector<64x128xf32>, vector<2x128xf32> -> vector<2x128xf32>
    %128 = vector.extract_strided_slice %1 {offsets = [4, 0], sizes = [1, 128], strides = [1, 1]} : vector<5x512xf32> to vector<1x128xf32>
    %129 = vector.broadcast %128 : vector<1x128xf32> to vector<2x128xf32>
    %130 = arith.addf %127, %129 : vector<2x128xf32>
    %c0_38 = arith.constant 0 : index
    %c0_39 = arith.constant 0 : index
    %131 = vector.load %arg8[%c0_38, %c0_39] : memref<2x128xf32, #tpu.memory_space<vmem>>, vector<2x128xf32>
    tpu.vector_store %arg8[%c0_38, %c0_39], %130 {strides = array<i32>} : memref<2x128xf32, #tpu.memory_space<vmem>>, vector<2x128xf32>,
    return
  }
}

</mosaic_0001>

<bundles_post_ra>
// kernel: tpu_custom_call.1
= control target key start
LH: loop header
LB: loop body
LE: loop exit
PB: predicated region body
PF: predicated region fallthrough
CT: control target
= control target key end

     0   :  { %vm61_vm0 = vcmask 1041408   ;;  %s1610_s0 = inlined_call_operand.vmem [shape: f32[22,90], index: 0, kind: input, shape index: {}]   ;;  %s1611_s1 = inlined_call_operand.vmem [shape: f32[90,64], index: 1, kind: input, shape index: {}]   ;;  %s1612_s2 = inlined_call_operand.vmem [shape: f32[6,64], index: 2, kind: input, shape index: {}]   ;;  %s1613_s3 = inlined_call_operand.vmem [shape: f32[128,64], index: 3, kind: input, shape index: {}]   ;;  %s1614_s4 = inlined_call_operand.vmem [shape: f32[128,512], index: 4, kind: input, shape index: {}]   ;;  %s1615_s5 = inlined_call_operand.vmem [shape: f32[5,512], index: 5, kind: input, shape index: {}]   ;;  %s1616_s6 = inlined_call_operand.vmem [shape: f32[512,64], index: 6, kind: input, shape index: {}]   ;;  %s1617_s7 = inlined_call_operand.vmem [shape: f32[64,128], index: 7, kind: input, shape index: {}]   ;;  %s1618_s8 = inlined_call_operand.hbm [shape: f32[2,128], index: 8, kind: output, shape index: {}]  }
   0x1   :  { %v49_v0 = vld [vmem:[%s1611_s1 + $0x58] sm:$0x3]  ;;  %v48_v1 = vld [vmem:[%s1611_s1 + $0x50] sm:$0xff]  ;;  %v47_v2 = vld [vmem:[%s1611_s1 + $0x48] sm:$0xff] }
   0x2   :  { %863 = vmatpush.msk.msra.mxu0 %vm61_vm0, %v49_v0  ;;  %v46_v3 = vld [vmem:[%s1611_s1 + $0x40] sm:$0xff] }
   0x4   :  { %70 = vmatpush.msra.mxu0 %v48_v1 }
   0x6   :  { %71 = vmatpush.msra.mxu0 %v47_v2 }
   0x7   :  { %13 = vsyncpa [#allocation3], 0  ;;  %v45_v4 = vld [vmem:[%s1611_s1 + $0x38] sm:$0xff]  ;;  %v44_v5 = vld [vmem:[%s1611_s1 + $0x30] sm:$0xff]  ;;  %vm51_vm1 = vcmask 736256   ;;  %v921_v17 = vmov 22.0  }
   0x8   :  { %72 = vmatpush.msra.mxu0 %v46_v3  ;;  %v43_v6 = vld [vmem:[%s1611_s1 + $0x28] sm:$0xff]  ;;  %v42_v7 = vld [vmem:[%s1611_s1 + $0x20] sm:$0xff]  ;;  %v41_v8 = vld [vmem:[%s1611_s1 + $0x18] sm:$0xff]  ;;  %877 = vrcp.f32 %v921_v17  ;;  %vm91_vm2 = vcmask 523264   ;;  %vm95_vm3 = vcmask 521216   ;;  %s922_s26 = smov 64  }
   0x9   :  { %v40_v9 = vld [vmem:[%s1611_s1 + $0x10] sm:$0xff]  ;;  %v39_v10 = vld [vmem:[%s1611_s1 + $0x8] sm:$0xff]  ;;  %v38_v11 = vld [vmem:[%s1611_s1] sm:$0xff]  ;;  %vm361_vm12 = vcmask 1041409   ;;  %s925_s10 = smov [#allocation2]   ;;  %s854_s12 = sshll.u32 %s1618_s8, 4  ;;  %s855_s12 = int_to_ptr.hbm [resolvable:$true] %s854_s12 }
   0xa   :  { %73 = vmatpush.msra.mxu0 %v45_v4  ;;  %v35_v12 = vld [vmem:[%s1610_s0] sm:$0xff]  ;;  %v36_v13 = vld [vmem:[%s1610_s0 + $0x8] sm:$0xff]  ;;  %v37_v14 = vld [vmem:[%s1610_s0 + $0x10] sm:$0x3f] }
   0xb   :  { %v1020_v16 = vld [vmem:[%s1612_s2] sm:$0x3f] }
   0xc   :  { %74 = vmatpush.msra.mxu0 %v44_v5  ;;  %v50_v19 = vperm.slane %v1020_v16, 0  ;;  %v144_v3 = vperm.slane %v1020_v16, 1 }
   0xe   :  { %75 = vmatpush.msra.mxu0 %v43_v6  ;;  %v878_v21 = vpop.eup %877  ;;  %v148_v6 = vperm.slane %v1020_v16, 2 }
   0xf   :  { %v105_v24 = vmul.f32 22.0, %v878_v21  ;;  %vm109_vm4 = vweird.f32 %v878_v21 }
  0x10   :  { %76 = vmatpush.msra.mxu0 %v42_v7 }
  0x11   :  { %v106_v30 = vsub.f32 1.0, %v105_v24 }
  0x12   :  { %77 = vmatpush.msra.mxu0 %v41_v8 }
  0x13   :  { %v107_v33 = vmul.f32 %v878_v21, %v106_v30 }
  0x14   :  { %78 = vmatpush.msra.mxu0 %v40_v9 }
  0x15   :  { %v108_v36 = vadd.f32 %v878_v21, %v107_v33 }
  0x16   :  { %79 = vmatpush.msra.mxu0 %v39_v10 }
  0x17   :  { %v110_v39 = vsel %vm109_vm4, %v878_v21, %v108_v36 }
  0x18   :  { %80 = vmatpush.msra.mxu0 %v38_v11 }
  0x19   :  { %864 = vmatmul.msk.f32.vlgmr.msra.gmra.mxu0 %vm51_vm1, %v35_v12 }
  0x21   :  { %865 = vmatmul.msk.f32.gmra.mxu0 %vm51_vm1, %v36_v13 }
  0x29   :  { %866 = vmatmul.msk.f32.gmra.mxu0 %vm51_vm1, %v37_v14 }
  0x96   :  { %v82_v15 = vpop.f32.mrf.mxu0 }
  0x97   :  { %v83_v22 = vadd.f32 %v82_v15, %v50_v19 }
  0x99   :  { %v92_v26 = vsel %vm91_vm2, %v83_v22, 0.0 }
  0x9e   :  { %v85_v18 = vpop.f32.mrf.mxu0 }
  0x9f   :  { %v86_v20 = vadd.f32 %v85_v18, %v50_v19 }
  0xa1   :  { %v93_v23 = vsel %vm91_vm2, %v86_v20, 0.0 }
  0xa2   :  { %v94_v28 = vadd.f32 %v93_v23, %v92_v26 }
  0xa6   :  { %v88_v25 = vpop.f32.mrf.mxu0 }
  0xa7   :  { %v89_v27 = vadd.f32 %v88_v25, %v50_v19 }
  0xa9   :  { %v96_v29 = vsel %vm95_vm3, %v89_v27, 0.0 }
  0xaa   :  { %v97_v31 = vadd.f32 %v96_v29, %v94_v28 }
  0xac   :  { %v98_v32 = vrot.slane %v97_v31, 4 }
  0xae   :  { %v99_v34 = vadd.f32 %v98_v32, %v97_v31 }
  0xb0   :  { %v100_v35 = vrot.slane %v99_v34, 2 }
  0xb2   :  { %v101_v37 = vadd.f32 %v100_v35, %v99_v34 }
  0xb4   :  { %v102_v38 = vrot.slane %v101_v37, 1 }
  0xb6   :  { %v103_v40 = vadd.f32 %v102_v38, %v101_v37 }
  0xb8   :  { %v111_v41 = vmul.f32 %v110_v39, %v103_v40 }
  0xba   :  { %v112_v42 = vsub.f32 %v83_v22, %v111_v41  ;;  %v113_v43 = vsub.f32 %v86_v20, %v111_v41  ;;  %v114_v44 = vsub.f32 %v89_v27, %v111_v41 }
  0xbc   :  { %v115_v45 = vmul.f32 %v112_v42, %v112_v42  ;;  %v116_v46 = vmul.f32 %v113_v43, %v113_v43  ;;  %v117_v47 = vmul.f32 %v114_v44, %v114_v44 }
  0xbe   :  { %v118_v48 = vsel %vm91_vm2, %v115_v45, 0.0  ;;  %v119_v49 = vsel %vm91_vm2, %v116_v46, 0.0  ;;  %v121_v51 = vsel %vm95_vm3, %v117_v47, 0.0  ;;  %v260_v45 = vld [vmem:[%s1613_s3 + $0x60] sm:$0xff]  ;;  %v259_v46 = vld [vmem:[%s1613_s3 + $0x58] sm:$0xff] }
  0xbf   :  { %v120_v50 = vadd.f32 %v119_v49, %v118_v48  ;;  %v258_v48 = vld [vmem:[%s1613_s3 + $0x50] sm:$0xff] }
  0xc1   :  { %v122_v52 = vadd.f32 %v121_v51, %v120_v50  ;;  %v257_v50 = vld [vmem:[%s1613_s3 + $0x48] sm:$0xff] }
  0xc3   :  { %v123_v53 = vrot.slane %v122_v52, 4 }
  0xc5   :  { %v124_v54 = vadd.f32 %v123_v53, %v122_v52 }
  0xc7   :  { %v125_v55 = vrot.slane %v124_v54, 2 }
  0xc9   :  { %v126_v56 = vadd.f32 %v125_v55, %v124_v54 }
  0xcb   :  { %v127_v57 = vrot.slane %v126_v56, 1 }
  0xcd   :  { %v128_v58 = vadd.f32 %v127_v57, %v126_v56  ;;  %v256_v57 = vld [vmem:[%s1613_s3 + $0x40] sm:$0xff] }
  0xcf   :  { %v129_v59 = vmul.f32 %v128_v58, %v110_v39  ;;  %v255_v58 = vld [vmem:[%s1613_s3 + $0x38] sm:$0xff] }
  0xd1   :  { %v130_v60 = vadd.f32 1e-05, %v129_v59  ;;  %v254_v59 = vld [vmem:[%s1613_s3 + $0x30] sm:$0xff] }
  0xd3   :  { %879 = vrsqrt.f32 %v130_v60  ;;  %vm137_vm6 = vweird.f32 %v130_v60 }
  0xd9   :  { %v880_v61 = vpop.eup %879 }
  0xda   :  { %v132_v62 = vmul.f32 %v880_v61, %v130_v60  ;;  %vm138_vm5 = vweird.f32 %v880_v61  ;;  %v253_v60 = vld [vmem:[%s1613_s3 + $0x28] sm:$0xff] }
  0xdb   :  { %vm139_vm7 = vmor %vm137_vm6, %vm138_vm5 }
  0xdc   :  { %v133_v63 = vmul.f32 %v880_v61, %v132_v62  ;;  %v251_v62 = vld [vmem:[%s1613_s3 + $0x18] sm:$0xff] }
  0xde   :  { %v134_v0 = vmul.f32 0.5, %v133_v63  ;;  %v250_v63 = vld [vmem:[%s1613_s3 + $0x10] sm:$0xff] }
  0xe0   :  { %v135_v1 = vsub.f32 1.5, %v134_v0  ;;  %v249_v0 = vld [vmem:[%s1613_s3 + $0x8] sm:$0xff] }
  0xe2   :  { %v136_v2 = vmul.f32 %v880_v61, %v135_v1  ;;  %v248_v1 = vld [vmem:[%s1613_s3] sm:$0xff] }
  0xe4   :  { %v140_v4 = vsel %vm139_vm7, %v880_v61, %v136_v2  ;;  %v252_v61 = vld [vmem:[%s1613_s3 + $0x20] sm:$0xff] }
  0xe5   :  { %v141_v5 = vmul.f32 %v140_v4, %v112_v42  ;;  %v142_v8 = vmul.f32 %v140_v4, %v113_v43  ;;  %v143_v10 = vmul.f32 %v140_v4, %v114_v44  ;;  %v263_v42 = vld [vmem:[%s1613_s3 + $0x78] sm:$0xff]  ;;  %v262_v43 = vld [vmem:[%s1613_s3 + $0x70] sm:$0xff]  ;;  %v261_v44 = vld [vmem:[%s1613_s3 + $0x68] sm:$0xff] }
  0xe6   :  { %272 = vmatpush.msra.mxu1 %v263_v42  ;;  %v430_v42 = vld [vmem:[%s1614_s4 + $0x1c8] sm:$0xff] }
  0xe7   :  { %v145_v7 = vmul.f32 %v144_v3, %v141_v5  ;;  %v146_v12 = vmul.f32 %v144_v3, %v142_v8  ;;  %v147_v21 = vmul.f32 %v144_v3, %v143_v10 }
  0xe8   :  { %273 = vmatpush.msra.mxu1 %v262_v43  ;;  %v431_v43 = vld [vmem:[%s1614_s4 + $0x1d0] sm:$0xff] }
  0xe9   :  { %v149_v9 = vadd.f32 %v148_v6, %v145_v7  ;;  %v150_v22 = vadd.f32 %v148_v6, %v146_v12  ;;  %v151_v27 = vadd.f32 %v148_v6, %v147_v21  ;;  %v923_v7 = vmov 8.0  }
  0xea   :  { %274 = vmatpush.msra.mxu1 %v261_v44  ;;  %881 = vrcp.f32 %v923_v7  ;;  %v432_v44 = vld [vmem:[%s1614_s4 + $0x1d8] sm:$0xff]  ;;  %v405_v7 = vld [vmem:[%s1614_s4 + $0x100] sm:$0xff] }
  0xeb   :  { %v152_v11 = vmax.f32 %v149_v9, 0.0  ;;  %v153_v28 = vmax.f32 %v150_v22, 0.0  ;;  %v154_v29 = vmax.f32 %v151_v27, 0.0  ;;  %v264_v9 = vperm.slane %v1020_v16, 3 }
  0xec   :  { %275 = vmatpush.msra.mxu1 %v260_v45  ;;  %v425_v45 = vld [vmem:[%s1614_s4 + $0x1a0] sm:$0xff] }
  0xed   :  { %v158_v13 = vrot.slane %v152_v11, 1  ;;  %v159_v14 = vrot.slane %v152_v11, 2  ;;  %v160_v15 = vrot.slane %v152_v11, 3  ;;  %v161_v17 = vrot.slane %v152_v11, 4 }
  0xee   :  { %v162_v18 = vrot.slane %v152_v11, 5  ;;  %v163_v19 = vrot.slane %v152_v11, 6  ;;  %v164_v20 = vrot.slane %v152_v11, 7  ;;  %v166_v30 = vrot.slane %v153_v28, 3  ;;  %276 = vmatpush.msra.mxu1 %v259_v46 }
  0xef   :  { %v192_v23 = vmax.f32 %v152_v11, %v158_v13  ;;  %v193_v24 = vmax.f32 %v159_v14, %v160_v15  ;;  %v167_v31 = vrot.slane %v153_v28, 4  ;;  %v168_v32 = vrot.slane %v153_v28, 5 }
  0xf0   :  { %v194_v25 = vmax.f32 %v161_v17, %v162_v18  ;;  %v195_v26 = vmax.f32 %v163_v19, %v164_v20  ;;  %v169_v33 = vrot.slane %v153_v28, 6  ;;  %v170_v34 = vrot.slane %v153_v28, 7  ;;  %277 = vmatpush.msra.mxu1 %v258_v48  ;;  %v882_v8 = vpop.eup %881  ;;  %v427_v48 = vld [vmem:[%s1614_s4 + $0x1b0] sm:$0xff] }
  0xf1   :  { %210 = vst [vmem:[#allocation1] ss:$9 sm:$0xff] %v192_v23  ;;  %v171_v35 = vrot.slane %v154_v29, 1  ;;  %v172_v36 = vrot.slane %v154_v29, 2  ;;  %v197_v37 = vmax.f32 %v166_v30, %v167_v31  ;;  %v165_v47 = vrot.slane %v153_v28, 1 }
  0xf2   :  { %212 = vst [vmem:[#allocation1 + $0x1] ss:$9 sm:$0xff] %v193_v24  ;;  %v198_v38 = vmax.f32 %v168_v32, %v169_v33  ;;  %v199_v40 = vmax.f32 %v170_v34, %v154_v29  ;;  %278 = vmatpush.msra.mxu1 %v257_v50  ;;  %v173_v52 = vrot.slane %v154_v29, 3  ;;  %v174_v53 = vrot.slane %v154_v29, 4 }
  0xf3   :  { %214 = vst [vmem:[#allocation1 + $0x2] ss:$9 sm:$0xff] %v194_v25  ;;  %v200_v41 = vmax.f32 %v171_v35, %v172_v36  ;;  %v196_v51 = vmax.f32 %v153_v28, %v165_v47  ;;  %v300_v10 = vmul.f32 8.0, %v882_v8  ;;  %vm304_vm8 = vweird.f32 %v882_v8  ;;  %v426_v47 = vld [vmem:[%s1614_s4 + $0x1a8] sm:$0xff] }
  0xf4   :  { %216 = vst [vmem:[#allocation1 + $0x3] ss:$9 sm:$0xff] %v195_v26  ;;  %v201_v55 = vmax.f32 %v173_v52, %v174_v53  ;;  %279 = vmatpush.msra.mxu1 %v256_v57  ;;  %v422_v52 = vld [vmem:[%s1614_s4 + $0x188] sm:$0xff]  ;;  %v423_v53 = vld [vmem:[%s1614_s4 + $0x190] sm:$0xff] }
  0xf5   :  { %v301_v13 = vsub.f32 1.0, %v300_v10  ;;  %v418_v57 = vld [vmem:[%s1614_s4 + $0x168] sm:$0xff]  ;;  %v407_v10 = vld [vmem:[%s1614_s4 + $0x110] sm:$0xff] }
  0xf6   :  { %280 = vmatpush.msra.mxu1 %v255_v58  ;;  %v419_v58 = vld [vmem:[%s1614_s4 + $0x170] sm:$0xff] }
  0xf7   :  { %v302_v17 = vmul.f32 %v882_v8, %v301_v13  ;;  %v401_v13 = vld [vmem:[%s1614_s4 + $0xe0] sm:$0xff] }
  0xf8   :  { %281 = vmatpush.msra.mxu1 %v254_v59  ;;  %v420_v59 = vld [vmem:[%s1614_s4 + $0x178] sm:$0xff] }
  0xf9   :  { %v303_v20 = vadd.f32 %v882_v8, %v302_v17  ;;  %v331_v17 = vperm.slane %v1020_v16, 5 }
  0xfa   :  { %282 = vmatpush.msra.mxu1 %v253_v60 }
  0xfb   :  { %v217_v39 = vld [vmem:[#allocation1] sm:$0xff]  ;;  %v305_v23 = vsel %vm304_vm8, %v882_v8, %v303_v20  ;;  %v406_v8 = vld [vmem:[%s1614_s4 + $0x108] sm:$0xff] }
  0xfc   :  { %218 = vst [vmem:[#allocation1] ss:$9 sm:$0xff] %v197_v37  ;;  %283 = vmatpush.msra.mxu1 %v252_v61  ;;  %v433_v37 = vld [vmem:[%s1614_s4 + $0x1e0] sm:$0xff] }
  0xfd   :  { %219 = vst [vmem:[#allocation1 + $0x1] ss:$9 sm:$0xff] %v198_v38  ;;  %441 = vmatpush.msra.mxu2 %v433_v37  ;;  %v413_v61 = vld [vmem:[%s1614_s4 + $0x140] sm:$0xff] }
  0xfe   :  { %220 = vst [vmem:[#allocation1 + $0x2] ss:$9 sm:$0xff] %v199_v40  ;;  %284 = vmatpush.msra.mxu1 %v251_v62  ;;  %v414_v62 = vld [vmem:[%s1614_s4 + $0x148] sm:$0xff]  ;;  %v397_v20 = vld [vmem:[%s1614_s4 + $0xc0] sm:$0xff] }
  0xff   :  { %221 = vst [vmem:[#allocation1 + $0x3] ss:$9 sm:$0xff] %v200_v41 }
 0x100   :  { %285 = vmatpush.msra.mxu1 %v250_v63  ;;  %v415_v63 = vld [vmem:[%s1614_s4 + $0x150] sm:$0xff] }
 0x102   :  { %286 = vmatpush.msra.mxu1 %v249_v0  ;;  %v416_v0 = vld [vmem:[%s1614_s4 + $0x158] sm:$0xff] }
 0x104   :  { %287 = vmatpush.msra.mxu1 %v248_v1 }
 0x106   :  { %v222_v49 = vld [vmem:[#allocation1] sm:$0xff] }
 0x107   :  { %231 = vst [vmem:[#allocation1 + $0x2] ss:$9 sm:$0xff] %v195_v26 }
 0x108   :  { %227 = vst [vmem:[#allocation1] ss:$9 sm:$0xff] %v193_v24 }
 0x109   :  { %229 = vst [vmem:[#allocation1 + $0x1] ss:$9 sm:$0xff] %v194_v25 }
 0x10a   :  { %233 = vst [vmem:[#allocation1 + $0x3] ss:$9 sm:$0xff] %v196_v51  ;;  %v421_v51 = vld [vmem:[%s1614_s4 + $0x180] sm:$0xff] }
 0x111   :  { %v234_v54 = vld [vmem:[#allocation1] sm:$0xff] }
 0x112   :  { %240 = vrot.lane.b32.xlu0 %v234_v54, %s922_s26  ;;  %235 = vst [vmem:[#allocation1] ss:$9 sm:$0xff] %v198_v38  ;;  %v434_v38 = vld [vmem:[%s1614_s4 + $0x1e8] sm:$0xff]  ;;  %v424_v54 = vld [vmem:[%s1614_s4 + $0x198] sm:$0xff] }
 0x113   :  { %236 = vst [vmem:[#allocation1 + $0x1] ss:$9 sm:$0xff] %v199_v40  ;;  %461 = vmatpush.msra.mxu3 %v434_v38  ;;  %v436_v40 = vld [vmem:[%s1614_s4 + $0x1f8] sm:$0xff]  ;;  %v387_v38 = vld [vmem:[%s1614_s4 + $0x70] sm:$0xff] }
 0x114   :  { %237 = vst [vmem:[#allocation1 + $0x2] ss:$9 sm:$0xff] %v200_v41  ;;  %v429_v41 = vld [vmem:[%s1614_s4 + $0x1c0] sm:$0xff]  ;;  %501 = vmatpush.msrb.mxu1 %v436_v40 }
 0x115   :  { %238 = vst [vmem:[#allocation1 + $0x3] ss:$9 sm:$0xff] %v201_v55  ;;  %442 = vmatpush.msra.mxu2 %v429_v41  ;;  %462 = vmatpush.msra.mxu3 %v430_v42  ;;  %v381_v42 = vld [vmem:[%s1614_s4 + $0x40] sm:$0xff] }
 0x116   :  { %502 = vmatpush.msrb.mxu1 %v432_v44 }
 0x117   :  { %443 = vmatpush.msra.mxu2 %v425_v45  ;;  %463 = vmatpush.msra.mxu3 %v426_v47  ;;  %v384_v47 = vld [vmem:[%s1614_s4 + $0x58] sm:$0xff] }
 0x119   :  { %444 = vmatpush.msra.mxu2 %v421_v51  ;;  %464 = vmatpush.msra.mxu3 %v422_v52  ;;  %v378_v51 = vld [vmem:[%s1614_s4 + $0x28] sm:$0xff] }
 0x11b   :  { %465 = vmatpush.msra.mxu3 %v418_v57 }
 0x11c   :  { %v239_v56 = vld [vmem:[#allocation1] sm:$0xff] }
 0x11d   :  { %242 = vrot.lane.b32.xlu0 %v239_v56, %s922_s26  ;;  %v417_v56 = vld [vmem:[%s1614_s4 + $0x160] sm:$0xff]  ;;  %466 = vmatpush.msra.mxu3 %v414_v62 }
 0x11e   :  { %445 = vmatpush.msra.mxu2 %v417_v56 }
 0x120   :  { %446 = vmatpush.msra.mxu2 %v413_v61 }
 0x184   :  { %v241_v2 = vpop.permute.xlu0 %240 }
 0x185   :  { %v246_v3 = vsel %vm91_vm2, %v217_v39, %v241_v2  ;;  %v435_v39 = vld [vmem:[%s1614_s4 + $0x1f0] sm:$0xff]  ;;  %v409_v2 = vld [vmem:[%s1614_s4 + $0x120] sm:$0xff] }
 0x186   :  { %267 = vst [vmem:[#allocation1] ss:$2 sm:$0xff] %v246_v3  ;;  %481 = vmatpush.msrb.mxu0 %v435_v39  ;;  %v410_v3 = vld [vmem:[%s1614_s4 + $0x128] sm:$0xff]  ;;  %447 = vmatpush.msra.mxu2 %v409_v2  ;;  %v388_v39 = vld [vmem:[%s1614_s4 + $0x78] sm:$0xff] }
 0x187   :  { %467 = vmatpush.msra.mxu3 %v410_v3  ;;  %v376_v2 = vld [vmem:[%s1614_s4 + $0x18] sm:$0xff] }
 0x188   :  { %482 = vmatpush.msrb.mxu0 %v431_v43  ;;  %448 = vmatpush.msra.mxu2 %v405_v7  ;;  %v382_v43 = vld [vmem:[%s1614_s4 + $0x48] sm:$0xff]  ;;  %v1298_v7 = vld [vmem:[%s1615_s5 + $0x10] sm:$0x1f] }
 0x189   :  { %468 = vmatpush.msra.mxu3 %v406_v8  ;;  %v1303_v8 = vld [vmem:[%s1615_s5 + $0x18] sm:$0x1f] }
 0x18a   :  { %483 = vmatpush.msrb.mxu0 %v427_v48  ;;  %449 = vmatpush.msra.mxu2 %v401_v13  ;;  %v1316_v13 = vld [vmem:[%s1615_s5 + $0x8] sm:$0x1f] }
 0x18c   :  { %484 = vmatpush.msrb.mxu0 %v423_v53  ;;  %450 = vmatpush.msra.mxu2 %v397_v20 }
 0x18e   :  { %485 = vmatpush.msrb.mxu0 %v419_v58 }
 0x18f   :  { %v243_v4 = vpop.permute.xlu0 %242 }
 0x190   :  { %v247_v5 = vsel %vm91_vm2, %v222_v49, %v243_v4  ;;  %v428_v49 = vld [vmem:[%s1614_s4 + $0x1b8] sm:$0xff]  ;;  %v411_v4 = vld [vmem:[%s1614_s4 + $0x130] sm:$0xff]  ;;  %486 = vmatpush.msrb.mxu0 %v415_v63  ;;  %v373_v63 = vld [vmem:[%s1614_s4] sm:$0xff] }
 0x191   :  { %269 = vst [vmem:[#allocation1 + $0x1] ss:$2 sm:$0xff] %v247_v5  ;;  %503 = vmatpush.msrb.mxu1 %v428_v49  ;;  %v412_v5 = vld [vmem:[%s1614_s4 + $0x138] sm:$0xff] }
 0x192   :  { %487 = vmatpush.msrb.mxu0 %v411_v4 }
 0x193   :  { %504 = vmatpush.msrb.mxu1 %v424_v54  ;;  %v379_v54 = vld [vmem:[%s1614_s4 + $0x30] sm:$0xff] }
 0x194   :  { %488 = vmatpush.msrb.mxu0 %v407_v10 }
 0x195   :  { %505 = vmatpush.msrb.mxu1 %v420_v59 }
 0x197   :  { %506 = vmatpush.msrb.mxu1 %v416_v0  ;;  %v374_v0 = vld [vmem:[%s1614_s4 + $0x8] sm:$0xff] }
 0x198   :  { %v270_v6 = vld.sshfl [vmem:[#allocation1] sm:$0xff pattern:$0x75316420] }
 0x199   :  { %288 = vmatmul.f32.vlgmr.msra.gmra.mxu1 %v270_v6 }
 0x19a   :  { %507 = vmatpush.msrb.mxu1 %v412_v5  ;;  %v924_v5 = vmov 2.0  }
 0x216   :  { %v289_v11 = vpop.f32.mrf.mxu1 }
 0x217   :  { %v290_v12 = vadd.f32 %v289_v11, %v264_v9  ;;  %v329_v9 = vperm.slane %v1020_v16, 4  ;;  %v408_v11 = vld [vmem:[%s1614_s4 + $0x118] sm:$0xff]  ;;  %v398_v16 = vld [vmem:[%s1614_s4 + $0xc8] sm:$0xff] }
 0x218   :  { %508 = vmatpush.msrb.mxu1 %v408_v11  ;;  %v440_v11 = vperm.slane %v1303_v8, 0 }
 0x219   :  { %v292_v14 = vsel %vm91_vm2, %v290_v12, 0.0 }
 0x21a   :  { %v293_v15 = vrot.slane %v292_v14, 4 }
 0x21c   :  { %v294_v18 = vadd.f32 %v293_v15, %v292_v14  ;;  %v402_v14 = vld [vmem:[%s1614_s4 + $0xe8] sm:$0xff] }
 0x21d   :  { %469 = vmatpush.msra.mxu3 %v402_v14 }
 0x21e   :  { %v295_v19 = vrot.slane %v294_v18, 2 }
 0x21f   :  { %470 = vmatpush.msra.mxu3 %v398_v16  ;;  %v438_v16 = vperm.slane %v1316_v13, 0 }
 0x220   :  { %v296_v21 = vadd.f32 %v295_v19, %v294_v18  ;;  %v403_v18 = vld [vmem:[%s1614_s4 + $0xf0] sm:$0xff]  ;;  %v404_v19 = vld [vmem:[%s1614_s4 + $0xf8] sm:$0xff] }
 0x221   :  { %489 = vmatpush.msrb.mxu0 %v403_v18  ;;  %509 = vmatpush.msrb.mxu1 %v404_v19 }
 0x222   :  { %v297_v22 = vrot.slane %v296_v21, 1 }
 0x224   :  { %v298_v24 = vadd.f32 %v297_v22, %v296_v21  ;;  %v399_v22 = vld [vmem:[%s1614_s4 + $0xd0] sm:$0xff] }
 0x225   :  { %490 = vmatpush.msrb.mxu0 %v399_v22  ;;  %v731_v22 = vld [vmem:[%s1616_s6 + $0x1f8] sm:$0xff] }
 0x226   :  { %v306_v25 = vmul.f32 %v305_v23, %v298_v24  ;;  %v393_v24 = vld [vmem:[%s1614_s4 + $0xa0] sm:$0xff] }
 0x227   :  { %451 = vmatpush.msra.mxu2 %v393_v24 }
 0x228   :  { %v1085_v26 = vsub.f32 %v290_v12, %v306_v25  ;;  %v394_v25 = vld [vmem:[%s1614_s4 + $0xa8] sm:$0xff] }
 0x229   :  { %471 = vmatpush.msra.mxu3 %v394_v25 }
 0x22a   :  { %v308_v27 = vmul.f32 %v1085_v26, %v1085_v26 }
 0x22c   :  { %v309_v28 = vsel %vm91_vm2, %v308_v27, 0.0  ;;  %v395_v27 = vld [vmem:[%s1614_s4 + $0xb0] sm:$0xff] }
 0x22d   :  { %v310_v29 = vrot.slane %v309_v28, 4  ;;  %491 = vmatpush.msrb.mxu0 %v395_v27  ;;  %v714_v27 = vld [vmem:[%s1616_s6 + $0x170] sm:$0xff] }
 0x22f   :  { %v311_v30 = vadd.f32 %v310_v29, %v309_v28  ;;  %v396_v28 = vld [vmem:[%s1614_s4 + $0xb8] sm:$0xff]  ;;  %v389_v29 = vld [vmem:[%s1614_s4 + $0x80] sm:$0xff] }
 0x230   :  { %452 = vmatpush.msra.mxu2 %v389_v29 }
 0x231   :  { %v312_v31 = vrot.slane %v311_v30, 2 }
 0x233   :  { %v313_v32 = vadd.f32 %v312_v31, %v311_v30  ;;  %v390_v30 = vld [vmem:[%s1614_s4 + $0x88] sm:$0xff] }
 0x234   :  { %472 = vmatpush.msra.mxu3 %v390_v30 }
 0x235   :  { %v314_v33 = vrot.slane %v313_v32, 1 }
 0x237   :  { %v315_v34 = vadd.f32 %v314_v33, %v313_v32  ;;  %v391_v32 = vld [vmem:[%s1614_s4 + $0x90] sm:$0xff]  ;;  %v392_v33 = vld [vmem:[%s1614_s4 + $0x98] sm:$0xff] }
 0x238   :  { %492 = vmatpush.msrb.mxu0 %v391_v32 }
 0x239   :  { %v316_v35 = vmul.f32 %v315_v34, %v305_v23  ;;  %v400_v23 = vld [vmem:[%s1614_s4 + $0xd8] sm:$0xff]  ;;  %v385_v34 = vld [vmem:[%s1614_s4 + $0x60] sm:$0xff] }
 0x23a   :  { %510 = vmatpush.msrb.mxu1 %v400_v23  ;;  %453 = vmatpush.msra.mxu2 %v385_v34 }
 0x23b   :  { %v1090_v36 = vadd.f32 1e-05, %v316_v35  ;;  %v386_v35 = vld [vmem:[%s1614_s4 + $0x68] sm:$0xff]  ;;  %493 = vmatpush.msrb.mxu0 %v387_v38 }
 0x23c   :  { %511 = vmatpush.msrb.mxu1 %v396_v28  ;;  %473 = vmatpush.msra.mxu3 %v386_v35  ;;  %v730_v28 = vld [vmem:[%s1616_s6 + $0x1f0] sm:$0xff] }
 0x23d   :  { %883 = vrsqrt.f32 %v1090_v36  ;;  %vm324_vm10 = vweird.f32 %v1090_v36  ;;  %454 = vmatpush.msra.mxu2 %v381_v42  ;;  %v683_v42 = vld [vmem:[%s1616_s6 + $0x78] sm:$0xff] }
 0x23e   :  { %512 = vmatpush.msrb.mxu1 %v392_v33  ;;  %474 = vmatpush.msra.mxu3 %v382_v43  ;;  %885 = vrcp.f32 %v924_v5  ;;  %v699_v43 = vld [vmem:[%s1616_s6 + $0xf8] sm:$0xff]  ;;  %v696_v5 = vld [vmem:[%s1616_s6 + $0xe0] sm:$0xff] }
 0x240   :  { %513 = vmatpush.msrb.mxu1 %v388_v39  ;;  %475 = vmatpush.msra.mxu3 %v378_v51  ;;  %v682_v51 = vld [vmem:[%s1616_s6 + $0x70] sm:$0xff] }
 0x242   :  { %514 = vmatpush.msrb.mxu1 %v384_v47  ;;  %476 = vmatpush.msra.mxu3 %v374_v0  ;;  %v712_v47 = vld [vmem:[%s1616_s6 + $0x160] sm:$0xff] }
 0x243   :  { %v884_v46 = vpop.eup %883 }
 0x244   :  { %v319_v50 = vmul.f32 %v884_v46, %v1090_v36  ;;  %vm325_vm9 = vweird.f32 %v884_v46  ;;  %753 = vmatpush.msrb.mxu3 %v699_v43  ;;  %v692_v43 = vld [vmem:[%s1616_s6 + $0xc0] sm:$0xff] }
 0x245   :  { %vm326_vm11 = vmor %vm324_vm10, %vm325_vm9 }
 0x246   :  { %v320_v55 = vmul.f32 %v884_v46, %v319_v50  ;;  %v377_v50 = vld [vmem:[%s1614_s4 + $0x20] sm:$0xff] }
 0x247   :  { %455 = vmatpush.msra.mxu2 %v377_v50 }
 0x248   :  { %v321_v60 = vmul.f32 0.5, %v320_v55  ;;  %v380_v55 = vld [vmem:[%s1614_s4 + $0x38] sm:$0xff] }
 0x249   :  { %515 = vmatpush.msrb.mxu1 %v380_v55  ;;  %456 = vmatpush.msra.mxu2 %v373_v63 }
 0x24a   :  { %v322_v1 = vsub.f32 1.5, %v321_v60 }
 0x24b   :  { %516 = vmatpush.msrb.mxu1 %v376_v2  ;;  %733 = vmatpush.msrb.mxu2 %v683_v42  ;;  %v676_v42 = vld [vmem:[%s1616_s6 + $0x40] sm:$0xff] }
 0x24c   :  { %v323_v6 = vmul.f32 %v884_v46, %v322_v1  ;;  %v375_v1 = vld [vmem:[%s1614_s4 + $0x10] sm:$0xff] }
 0x24d   :  { %793 = vmatpush.msra.mxu1 %v731_v22  ;;  %734 = vmatpush.msrb.mxu2 %v682_v51 }
 0x24e   :  { %v327_v12 = vsel %vm326_vm11, %v884_v46, %v323_v6  ;;  %v383_v46 = vld [vmem:[%s1614_s4 + $0x50] sm:$0xff]  ;;  %v1293_v6 = vpop.eup %885 }
 0x24f   :  { %v328_v15 = vmul.f32 %v327_v12, %v1085_v26  ;;  %494 = vmatpush.msrb.mxu0 %v383_v46  ;;  %v550_v10 = vmul.f32 2.0, %v1293_v6  ;;  %v1311_v12 = vld [vmem:[%s1615_s5] sm:$0x1f]  ;;  %794 = vmatpush.msra.mxu1 %v730_v28  ;;  %vm554_vm13 = vweird.f32 %v1293_v6  ;;  %v707_v28 = vld [vmem:[%s1616_s6 + $0x138] sm:$0xff]  ;;  %s852_s5 = sshll.u32 %s925_s10, 4  ;;  %s853_s5 = int_to_ptr.vmem [resolvable:$true] %s852_s5 }
 0x250   :  { %v437_v20 = vperm.slane %v1311_v12, 0 }
 0x251   :  { %v330_v21 = vmul.f32 %v329_v9, %v328_v15  ;;  %495 = vmatpush.msrb.mxu0 %v379_v54  ;;  %v439_v9 = vperm.slane %v1298_v7, 0  ;;  %v551_v18 = vsub.f32 1.0, %v550_v10 }
 0x253   :  { %v332_v26 = vadd.f32 %v331_v17, %v330_v21  ;;  %496 = vmatpush.msrb.mxu0 %v375_v1  ;;  %v715_v21 = vld [vmem:[%s1616_s6 + $0x178] sm:$0xff]  ;;  %v552_v29 = vmul.f32 %v1293_v6, %v551_v18  ;;  %v726_v1 = vld [vmem:[%s1616_s6 + $0x1d0] sm:$0xff] }
 0x254   :  { %v679_v18 = vld [vmem:[%s1616_s6 + $0x58] sm:$0xff] }
 0x255   :  { %v333_v31 = vmax.f32 %v332_v26, 0.0  ;;  %773 = vmatpush.msra.mxu0 %v715_v21 }
 0x257   :  { %v335_v36 = vrot.slane %v333_v31, 2  ;;  %v337_v37 = vrot.slane %v333_v31, 6  ;;  %v336_v40 = vrot.slane %v333_v31, 4  ;;  %v867_v41 = vrot.slane %v333_v31, 9  ;;  %774 = vmatpush.msra.mxu0 %v714_v27  ;;  %v694_v27 = vld [vmem:[%s1616_s6 + $0xd0] sm:$0xff] }
 0x259   :  { %v868_v44 = vrot.slane %v335_v36, 9  ;;  %v870_v45 = vrot.slane %v337_v37, 9  ;;  %v869_v48 = vrot.slane %v336_v40, 9  ;;  %v353_v49 = vmax.f32 %v333_v31, %v867_v41 }
 0x25b   :  { %v354_v52 = vmax.f32 %v335_v36, %v868_v44  ;;  %v356_v53 = vmax.f32 %v337_v37, %v870_v45  ;;  %v355_v56 = vmax.f32 %v336_v40, %v869_v48  ;;  %v359_v59 = vperm.slane %v353_v49, 0  ;;  %v713_v36 = vld [vmem:[%s1616_s6 + $0x168] sm:$0xff]  ;;  %v728_v48 = vld [vmem:[%s1616_s6 + $0x1e0] sm:$0xff] }
 0x25c   :  { %v729_v37 = vld [vmem:[%s1616_s6 + $0x1e8] sm:$0xff]  ;;  %775 = vmatpush.msra.mxu0 %v713_v36  ;;  %v553_v44 = vadd.f32 %v1293_v6, %v552_v29  ;;  %v706_v36 = vld [vmem:[%s1616_s6 + $0x130] sm:$0xff] }
 0x25d   :  { %v366_v57 = vperm.slane %v354_v52, 0  ;;  %v367_v58 = vperm.slane %v356_v53, 0  ;;  %v360_v60 = vperm.slane %v355_v56, 0  ;;  %795 = vmatpush.msra.mxu1 %v729_v37  ;;  %v698_v52 = vld [vmem:[%s1616_s6 + $0xf0] sm:$0xff]  ;;  %v711_v53 = vld [vmem:[%s1616_s6 + $0x158] sm:$0xff] }
 0x25e   :  { %776 = vmatpush.msra.mxu0 %v712_v47  ;;  %754 = vmatpush.msrb.mxu3 %v698_v52  ;;  %v727_v56 = vld [vmem:[%s1616_s6 + $0x1d8] sm:$0xff] }
 0x25f   :  { %v368_v61 = vsel %vm361_vm12, %v367_v58, %v366_v57  ;;  %v362_v62 = vsel %vm361_vm12, %v360_v60, %v359_v59  ;;  %796 = vmatpush.msra.mxu1 %v728_v48  ;;  %v681_v59 = vld [vmem:[%s1616_s6 + $0x68] sm:$0xff] }
 0x260   :  { %369 = vrot.lane.b32.xlu1 %v368_v61, %s922_s26  ;;  %777 = vmatpush.msra.mxu0 %v711_v53  ;;  %v697_v60 = vld [vmem:[%s1616_s6 + $0xe8] sm:$0xff]  ;;  %v710_v61 = vld [vmem:[%s1616_s6 + $0x150] sm:$0xff] }
 0x261   :  { %797 = vmatpush.msra.mxu1 %v727_v56  ;;  %735 = vmatpush.msrb.mxu2 %v681_v59  ;;  %v674_v56 = vld [vmem:[%s1616_s6 + $0x30] sm:$0xff] }
 0x262   :  { %755 = vmatpush.msrb.mxu3 %v697_v60  ;;  %778 = vmatpush.msra.mxu0 %v710_v61 }
 0x263   :  { %798 = vmatpush.msra.mxu1 %v726_v1 }
 0x264   :  { %756 = vmatpush.msrb.mxu3 %v696_v5 }
 0x2d2   :  { %v370_v3 = vpop.permute.xlu1 %369 }
 0x2d3   :  { %v372_v4 = vsel %vm91_vm2, %v362_v62, %v370_v3  ;;  %v1393_v62 = vsel %vm554_vm13, %v1293_v6, %v553_v44  ;;  %v709_v6 = vld [vmem:[%s1616_s6 + $0x148] sm:$0xff] }
 0x2d4   :  { %457 = vmatmul.f32.vlgmr.msra.gmra.mxu2 %v372_v4  ;;  %477 = vmatmul.f32.vlgmr.msra.gmra.mxu3 %v372_v4  ;;  %v705_v44 = vld [vmem:[%s1616_s6 + $0x128] sm:$0xff] }
 0x2d5   :  { %497 = vmatmul.f32.vlgmr.msrb.gmra.mxu0 %v372_v4  ;;  %517 = vmatmul.f32.vlgmr.msrb.gmra.mxu1 %v372_v4  ;;  %v680_v4 = vld [vmem:[%s1616_s6 + $0x60] sm:$0xff] }
 0x2d6   :  { %736 = vmatpush.msrb.mxu2 %v680_v4  ;;  %779 = vmatpush.msra.mxu0 %v709_v6  ;;  %v702_v4 = vld [vmem:[%s1616_s6 + $0x110] sm:$0xff] }
 0x2d8   :  { %737 = vmatpush.msrb.mxu2 %v679_v18  ;;  %v701_v18 = vld [vmem:[%s1616_s6 + $0x108] sm:$0xff] }
 0x352   :  { %v498_v14 = vpop.f32.mrf.mxu0  ;;  %v518_v15 = vpop.f32.mrf.mxu1 }
 0x353   :  { %v1318_v17 = vadd.f32 %v498_v14, %v439_v9  ;;  %v1320_v19 = vadd.f32 %v518_v15, %v440_v11  ;;  %v725_v11 = vld [vmem:[%s1616_s6 + $0x1c8] sm:$0xff] }
 0x354   :  { %799 = vmatpush.msra.mxu1 %v725_v11 }
 0x355   :  { %v535_v23 = vsel %vm61_vm0, %v1318_v17, 0.0  ;;  %v542_v24 = vsel %vm61_vm0, %v1320_v19, 0.0 }
 0x356   :  { %v536_v25 = vrot.slane %v535_v23, 4  ;;  %v543_v26 = vrot.slane %v542_v24, 4 }
 0x357   :  { %v458_v30 = vpop.f32.mrf.mxu2  ;;  %v478_v31 = vpop.f32.mrf.mxu3 }
 0x358   :  { %v537_v32 = vadd.f32 %v536_v25, %v535_v23  ;;  %v544_v33 = vadd.f32 %v543_v26, %v542_v24  ;;  %v1341_v34 = vadd.f32 %v458_v30, %v437_v20  ;;  %v1343_v35 = vadd.f32 %v478_v31, %v438_v16  ;;  %v695_v20 = vld [vmem:[%s1616_s6 + $0xd8] sm:$0xff]  ;;  %v708_v16 = vld [vmem:[%s1616_s6 + $0x140] sm:$0xff]  ;;  %v678_v26 = vld [vmem:[%s1616_s6 + $0x50] sm:$0xff] }
 0x359   :  { %757 = vmatpush.msrb.mxu3 %v695_v20  ;;  %v724_v23 = vld [vmem:[%s1616_s6 + $0x1c0] sm:$0xff]  ;;  %780 = vmatpush.msra.mxu0 %v708_v16 }
 0x35a   :  { %v538_v38 = vrot.slane %v537_v32, 2  ;;  %v545_v39 = vrot.slane %v544_v33, 2  ;;  %v521_v40 = vsel %vm61_vm0, %v1341_v34, 0.0  ;;  %v528_v41 = vsel %vm61_vm0, %v1343_v35, 0.0  ;;  %800 = vmatpush.msra.mxu1 %v724_v23  ;;  %738 = vmatpush.msrb.mxu2 %v678_v26  ;;  %v671_v23 = vld [vmem:[%s1616_s6 + $0x18] sm:$0xff] }
 0x35b   :  { %v522_v45 = vrot.slane %v521_v40, 4  ;;  %v529_v46 = vrot.slane %v528_v41, 4  ;;  %758 = vmatpush.msrb.mxu3 %v694_v27  ;;  %781 = vmatpush.msra.mxu0 %v707_v28  ;;  %v687_v26 = vld [vmem:[%s1616_s6 + $0x98] sm:$0xff]  ;;  %v700_v28 = vld [vmem:[%s1616_s6 + $0x100] sm:$0xff] }
 0x35c   :  { %v539_v49 = vadd.f32 %v538_v38, %v537_v32  ;;  %v546_v50 = vadd.f32 %v545_v39, %v544_v33  ;;  %v677_v32 = vld [vmem:[%s1616_s6 + $0x48] sm:$0xff]  ;;  %v722_v39 = vld [vmem:[%s1616_s6 + $0x1b0] sm:$0xff] }
 0x35d   :  { %v523_v54 = vadd.f32 %v522_v45, %v521_v40  ;;  %v530_v55 = vadd.f32 %v529_v46, %v528_v41  ;;  %v693_v33 = vld [vmem:[%s1616_s6 + $0xc8] sm:$0xff]  ;;  %739 = vmatpush.msrb.mxu2 %v677_v32  ;;  %782 = vmatpush.msra.mxu0 %v706_v36  ;;  %v670_v32 = vld [vmem:[%s1616_s6 + $0x10] sm:$0xff] }
 0x35e   :  { %v540_v57 = vrot.slane %v539_v49, 1  ;;  %v547_v58 = vrot.slane %v546_v50, 1  ;;  %759 = vmatpush.msrb.mxu3 %v693_v33  ;;  %v686_v33 = vld [vmem:[%s1616_s6 + $0x90] sm:$0xff]  ;;  %v669_v36 = vld [vmem:[%s1616_s6 + $0x8] sm:$0xff] }
 0x35f   :  { %v524_v63 = vrot.slane %v523_v54, 2  ;;  %v531_v0 = vrot.slane %v530_v55, 2  ;;  %740 = vmatpush.msrb.mxu2 %v676_v42  ;;  %783 = vmatpush.msra.mxu0 %v705_v44  ;;  %v668_v42 = vld [vmem:[%s1616_s6] sm:$0xff] }
 0x360   :  { %v541_v2 = vadd.f32 %v540_v57, %v539_v49  ;;  %v548_v3 = vadd.f32 %v547_v58, %v546_v50  ;;  %760 = vmatpush.msrb.mxu3 %v692_v43  ;;  %v721_v49 = vld [vmem:[%s1616_s6 + $0x1a8] sm:$0xff]  ;;  %v675_v50 = vld [vmem:[%s1616_s6 + $0x38] sm:$0xff]  ;;  %v690_v57 = vld [vmem:[%s1616_s6 + $0xb0] sm:$0xff] }
 0x361   :  { %v525_v9 = vadd.f32 %v524_v63, %v523_v54  ;;  %v532_v10 = vadd.f32 %v531_v0, %v530_v55  ;;  %741 = vmatpush.msrb.mxu2 %v675_v50  ;;  %v720_v54 = vld [vmem:[%s1616_s6 + $0x1a0] sm:$0xff]  ;;  %v703_v58 = vld [vmem:[%s1616_s6 + $0x118] sm:$0xff] }
 0x362   :  { %v558_v14 = vmul.f32 %v1393_v62, %v541_v2  ;;  %v559_v15 = vmul.f32 %v1393_v62, %v548_v3  ;;  %v719_v63 = vld [vmem:[%s1616_s6 + $0x198] sm:$0xff]  ;;  %v673_v2 = vld [vmem:[%s1616_s6 + $0x28] sm:$0xff]  ;;  %v684_v43 = vld [vmem:[%s1616_s6 + $0x80] sm:$0xff] }
 0x363   :  { %v526_v21 = vrot.slane %v525_v9, 1  ;;  %v533_v22 = vrot.slane %v532_v10, 1  ;;  %742 = vmatpush.msrb.mxu2 %v674_v56  ;;  %v689_v3 = vld [vmem:[%s1616_s6 + $0xa8] sm:$0xff] }
 0x364   :  { %v1425_v24 = vsub.f32 %v1318_v17, %v558_v14  ;;  %v1428_v25 = vsub.f32 %v1320_v19, %v559_v15  ;;  %v723_v19 = vld [vmem:[%s1616_s6 + $0x1b8] sm:$0xff]  ;;  %v672_v14 = vld [vmem:[%s1616_s6 + $0x20] sm:$0xff] }
 0x365   :  { %v527_v29 = vadd.f32 %v526_v21, %v525_v9  ;;  %v534_v17 = vadd.f32 %v533_v22, %v532_v10  ;;  %801 = vmatpush.msra.mxu1 %v723_v19  ;;  %743 = vmatpush.msrb.mxu2 %v673_v2  ;;  %v718_v10 = vld [vmem:[%s1616_s6 + $0x190] sm:$0xff]  ;;  %v688_v15 = vld [vmem:[%s1616_s6 + $0xa0] sm:$0xff]  ;;  %v717_v22 = vld [vmem:[%s1616_s6 + $0x188] sm:$0xff] }
 0x366   :  { %v566_v30 = vmul.f32 %v1425_v24, %v1425_v24  ;;  %v567_v31 = vmul.f32 %v1428_v25, %v1428_v25 }
 0x367   :  { %v556_v37 = vmul.f32 %v1393_v62, %v527_v29  ;;  %v557_v38 = vmul.f32 %v1393_v62, %v534_v17  ;;  %802 = vmatpush.msra.mxu1 %v722_v39  ;;  %744 = vmatpush.msrb.mxu2 %v672_v14  ;;  %v716_v29 = vld [vmem:[%s1616_s6 + $0x180] sm:$0xff]  ;;  %v658_v14 = vperm.slane %v1298_v7, 2 }
 0x368   :  { %v582_v40 = vsel %vm61_vm0, %v566_v30, 0.0  ;;  %v589_v41 = vsel %vm61_vm0, %v567_v31, 0.0 }
 0x369   :  { %v583_v45 = vrot.slane %v582_v40, 4  ;;  %v590_v46 = vrot.slane %v589_v41, 4  ;;  %v1472_v47 = vsub.f32 %v1341_v34, %v556_v37  ;;  %v1475_v48 = vsub.f32 %v1343_v35, %v557_v38  ;;  %803 = vmatpush.msra.mxu1 %v721_v49  ;;  %v691_v34 = vld [vmem:[%s1616_s6 + $0xb8] sm:$0xff]  ;;  %v704_v35 = vld [vmem:[%s1616_s6 + $0x120] sm:$0xff]  ;;  %745 = vmatpush.msrb.mxu2 %v671_v23 }
 0x36a   :  { %761 = vmatpush.msrb.mxu3 %v691_v34  ;;  %784 = vmatpush.msra.mxu0 %v704_v35  ;;  %v659_v23 = vperm.slane %v1303_v8, 2 }
 0x36b   :  { %v584_v51 = vadd.f32 %v583_v45, %v582_v40  ;;  %v591_v52 = vadd.f32 %v590_v46, %v589_v41  ;;  %v564_v53 = vmul.f32 %v1472_v47, %v1472_v47  ;;  %v565_v55 = vmul.f32 %v1475_v48, %v1475_v48  ;;  %804 = vmatpush.msra.mxu1 %v720_v54  ;;  %v685_v40 = vld [vmem:[%s1616_s6 + $0x88] sm:$0xff] }
 0x36c   :  { %762 = vmatpush.msrb.mxu3 %v690_v57  ;;  %785 = vmatpush.msra.mxu0 %v703_v58 }
 0x36d   :  { %v585_v59 = vrot.slane %v584_v51, 2  ;;  %v592_v60 = vrot.slane %v591_v52, 2  ;;  %v568_v61 = vsel %vm61_vm0, %v564_v53, 0.0  ;;  %v575_v1 = vsel %vm61_vm0, %v565_v55, 0.0  ;;  %805 = vmatpush.msra.mxu1 %v719_v63  ;;  %746 = vmatpush.msrb.mxu2 %v670_v32 }
 0x36e   :  { %v569_v0 = vrot.slane %v568_v61, 4  ;;  %v576_v9 = vrot.slane %v575_v1, 4  ;;  %763 = vmatpush.msrb.mxu3 %v689_v3  ;;  %786 = vmatpush.msra.mxu0 %v702_v4  ;;  %v656_v32 = vperm.slane %v1311_v12, 2 }
 0x36f   :  { %v586_v5 = vadd.f32 %v585_v59, %v584_v51  ;;  %v593_v6 = vadd.f32 %v592_v60, %v591_v52  ;;  %806 = vmatpush.msra.mxu1 %v718_v10  ;;  %747 = vmatpush.msrb.mxu2 %v669_v36 }
 0x370   :  { %v570_v11 = vadd.f32 %v569_v0, %v568_v61  ;;  %v577_v21 = vadd.f32 %v576_v9, %v575_v1  ;;  %764 = vmatpush.msrb.mxu3 %v688_v15  ;;  %787 = vmatpush.msra.mxu0 %v701_v18  ;;  %v651_v15 = vperm.slane %v1303_v8, 1 }
 0x371   :  { %v587_v20 = vrot.slane %v586_v5, 1  ;;  %v594_v16 = vrot.slane %v593_v6, 1  ;;  %807 = vmatpush.msra.mxu1 %v717_v22  ;;  %748 = vmatpush.msrb.mxu2 %v668_v42 }
 0x372   :  { %v571_v27 = vrot.slane %v570_v11, 2  ;;  %v578_v30 = vrot.slane %v577_v21, 2  ;;  %765 = vmatpush.msrb.mxu3 %v687_v26  ;;  %788 = vmatpush.msra.mxu0 %v700_v28 }
 0x373   :  { %v588_v17 = vadd.f32 %v587_v20, %v586_v5  ;;  %v595_v19 = vadd.f32 %v594_v16, %v593_v6  ;;  %808 = vmatpush.msra.mxu1 %v716_v29  ;;  %v650_v6 = vperm.slane %v1298_v7, 1 }
 0x374   :  { %v572_v31 = vadd.f32 %v571_v27, %v570_v11  ;;  %v579_v39 = vadd.f32 %v578_v30, %v577_v21  ;;  %766 = vmatpush.msrb.mxu3 %v686_v33 }
 0x375   :  { %v598_v37 = vmul.f32 %v588_v17, %v1393_v62  ;;  %v599_v38 = vmul.f32 %v595_v19, %v1393_v62  ;;  %v648_v17 = vperm.slane %v1311_v12, 1 }
 0x376   :  { %v573_v41 = vrot.slane %v572_v31, 1  ;;  %v580_v46 = vrot.slane %v579_v39, 1  ;;  %767 = vmatpush.msrb.mxu3 %v685_v40 }
 0x377   :  { %v602_v44 = vadd.f32 1e-05, %v598_v37  ;;  %v603_v45 = vadd.f32 1e-05, %v599_v38  ;;  %v657_v37 = vperm.slane %v1316_v13, 2 }
 0x378   :  { %v574_v49 = vadd.f32 %v573_v41, %v572_v31  ;;  %v581_v50 = vadd.f32 %v580_v46, %v579_v39  ;;  %768 = vmatpush.msrb.mxu3 %v684_v43  ;;  %v817_v46 = vld [vmem:[%s1617_s7 + $0x18] sm:$0xff] }
 0x379   :  { %887 = vrsqrt.f32 %v602_v44  ;;  %vm630_vm0 = vweird.f32 %v602_v44  ;;  %vm640_vm3 = vweird.f32 %v603_v45 }
 0x37a   :  { %889 = vrsqrt.f32 %v603_v45  ;;  %v596_v34 = vmul.f32 %v574_v49, %v1393_v62  ;;  %v597_v35 = vmul.f32 %v581_v50, %v1393_v62  ;;  %v816_v49 = vld [vmem:[%s1617_s7 + $0x10] sm:$0xff]  ;;  %v815_v50 = vld [vmem:[%s1617_s7 + $0x8] sm:$0xff] }
 0x37c   :  { %v600_v51 = vadd.f32 1e-05, %v596_v34  ;;  %v601_v52 = vadd.f32 1e-05, %v597_v35  ;;  %v814_v34 = vld [vmem:[%s1617_s7] sm:$0xff]  ;;  %v732_v35 = vperm.slane %v1311_v12, 3 }
 0x37e   :  { %891 = vrsqrt.f32 %v600_v51  ;;  %vm610_vm7 = vweird.f32 %v600_v51  ;;  %vm620_vm9 = vweird.f32 %v601_v52 }
 0x37f   :  { %v888_v53 = vpop.eup %887  ;;  %893 = vrsqrt.f32 %v601_v52 }
 0x380   :  { %v890_v54 = vpop.eup %889  ;;  %v625_v55 = vmul.f32 %v888_v53, %v602_v44  ;;  %vm631_vm14 = vweird.f32 %v888_v53 }
 0x381   :  { %v635_v56 = vmul.f32 %v890_v54, %v603_v45  ;;  %vm641_vm15 = vweird.f32 %v890_v54  ;;  %vm632_vm1 = vmor %vm630_vm0, %vm631_vm14  ;;  %v818_v45 = vld [vmem:[%s1617_s7 + $0x20] sm:$0xff] }
 0x382   :  { %v626_v57 = vmul.f32 %v888_v53, %v625_v55  ;;  %vm642_vm4 = vmor %vm640_vm3, %vm641_vm15 }
 0x383   :  { %v636_v58 = vmul.f32 %v890_v54, %v635_v56 }
 0x384   :  { %v892_v59 = vpop.eup %891  ;;  %v627_v60 = vmul.f32 0.5, %v626_v57 }
 0x385   :  { %v894_v61 = vpop.eup %893  ;;  %v637_v63 = vmul.f32 0.5, %v636_v58  ;;  %v605_v0 = vmul.f32 %v892_v59, %v600_v51  ;;  %vm611_vm5 = vweird.f32 %v892_v59 }
 0x386   :  { %v628_v1 = vsub.f32 1.5, %v627_v60  ;;  %v615_v2 = vmul.f32 %v894_v61, %v601_v52  ;;  %vm621_vm6 = vweird.f32 %v894_v61  ;;  %vm612_vm8 = vmor %vm610_vm7, %vm611_vm5  ;;  %v822_v60 = vperm.slane %v1311_v12, 4 }
 0x387   :  { %v638_v3 = vsub.f32 1.5, %v637_v63  ;;  %v606_v62 = vmul.f32 %v892_v59, %v605_v0  ;;  %vm622_vm10 = vmor %vm620_vm9, %vm621_vm6 }
 0x388   :  { %v629_v4 = vmul.f32 %v888_v53, %v628_v1  ;;  %v616_v5 = vmul.f32 %v894_v61, %v615_v2 }
 0x389   :  { %v639_v9 = vmul.f32 %v890_v54, %v638_v3  ;;  %v607_v10 = vmul.f32 0.5, %v606_v62 }
 0x38a   :  { %v633_v11 = vsel %vm632_vm1, %v888_v53, %v629_v4  ;;  %v617_v18 = vmul.f32 0.5, %v616_v5 }
 0x38b   :  { %v646_v20 = vmul.f32 %v633_v11, %v1425_v24  ;;  %v643_v16 = vsel %vm642_vm4, %v890_v54, %v639_v9  ;;  %v608_v21 = vsub.f32 1.5, %v607_v10  ;;  %v649_v24 = vperm.slane %v1316_v13, 1  ;;  %v819_v13 = vld [vmem:[%s1617_s7 + $0x28] sm:$0xff] }
 0x38c   :  { %v647_v22 = vmul.f32 %v643_v16, %v1428_v25  ;;  %v618_v26 = vsub.f32 1.5, %v617_v18 }
 0x38d   :  { %v654_v27 = vmul.f32 %v650_v6, %v646_v20  ;;  %v609_v28 = vmul.f32 %v892_v59, %v608_v21 }
 0x38e   :  { %v655_v29 = vmul.f32 %v651_v15, %v647_v22  ;;  %v619_v7 = vmul.f32 %v894_v61, %v618_v26 }
 0x38f   :  { %v613_v19 = vsel %vm612_vm8, %v892_v59, %v609_v28  ;;  %v662_v30 = vadd.f32 %v658_v14, %v654_v27 }
 0x390   :  { %v644_v25 = vmul.f32 %v613_v19, %v1472_v47  ;;  %v623_v31 = vsel %vm622_vm10, %v894_v61, %v619_v7  ;;  %v663_v8 = vadd.f32 %v659_v23, %v655_v29  ;;  %v821_v47 = vld [vmem:[%s1617_s7 + $0x38] sm:$0xff] }
 0x391   :  { %v645_v33 = vmul.f32 %v623_v31, %v1475_v48  ;;  %v666_v36 = vmax.f32 %v662_v30, 0.0  ;;  %v820_v48 = vld [vmem:[%s1617_s7 + $0x30] sm:$0xff]  ;;  %834 = vmatpush.msra.mxu2 %v821_v47 }
 0x392   :  { %v667_v38 = vmax.f32 %v663_v8, 0.0  ;;  %v652_v39 = vmul.f32 %v648_v17, %v644_v25 }
 0x393   :  { %789 = vmatmul.f32.vlgmr.msra.gmra.mxu0 %v666_v36  ;;  %v653_v40 = vmul.f32 %v649_v24, %v645_v33  ;;  %835 = vmatpush.msra.mxu2 %v820_v48 }
 0x394   :  { %809 = vmatmul.f32.vlgmr.msra.gmra.mxu1 %v667_v38  ;;  %v660_v41 = vadd.f32 %v656_v32, %v652_v39 }
 0x395   :  { %v661_v42 = vadd.f32 %v657_v37, %v653_v40  ;;  %836 = vmatpush.msra.mxu2 %v819_v13 }
 0x396   :  { %v664_v43 = vmax.f32 %v660_v41, 0.0 }
 0x397   :  { %v665_v44 = vmax.f32 %v661_v42, 0.0  ;;  %837 = vmatpush.msra.mxu2 %v818_v45 }
 0x398   :  { %749 = vmatmul.f32.vlgmr.msrb.gmra.mxu2 %v664_v43 }
 0x399   :  { %769 = vmatmul.f32.vlgmr.msrb.gmra.mxu3 %v665_v44  ;;  %838 = vmatpush.msra.mxu2 %v817_v46 }
 0x39b   :  { %839 = vmatpush.msra.mxu2 %v816_v49 }
 0x39d   :  { %840 = vmatpush.msra.mxu2 %v815_v50 }
 0x39f   :  { %841 = vmatpush.msra.mxu2 %v814_v34 }
 0x410   :  { %v790_v55 = vpop.f32.mrf.mxu0 }
 0x411   :  { %v810_v57 = vpop.f32.mrf.mxu1 }
 0x41b   :  { %v750_v51 = vpop.f32.mrf.mxu2 }
 0x41c   :  { %v751_v52 = vadd.f32 %v750_v51, %v732_v35  ;;  %v770_v53 = vpop.f32.mrf.mxu3 }
 0x41e   :  { %v771_v54 = vadd.f32 %v770_v53, %v751_v52 }
 0x420   :  { %v791_v56 = vadd.f32 %v790_v55, %v771_v54 }
 0x422   :  { %v811_v58 = vadd.f32 %v810_v57, %v791_v56 }
 0x424   :  { %v813_v59 = vmax.f32 %v811_v58, 0.0 }
 0x426   :  { %871 = vmatmul.msk.f32.vlgmr.msra.gmra.mxu2 %vm91_vm2, %v813_v59 }
 0x4a9   :  { %v843_v61 = vpop.f32.mrf.mxu2 }
 0x4aa   :  { %v844_v63 = vadd.f32 %v843_v61, %v822_v60 }
 0x4ac   :  { %846 = vst [vmem:[#allocation2] sm:$0x3] %v844_v63 }
 0x4ad   :  { %857 = dma.vmem_to_hbm [thread:$0]  %s853_s5, 32, %s855_s12, [#allocation3]  }
 0x4ae   :  { %919 = dma.done.wait [#allocation3], 32  }
 0x4af   :  { %920 = vsyncadd [#allocation3], 4294967264 }
 0x4b0   :  { %862 = vsyncpa [#allocation3], 1 }

</bundles_post_ra>
